<compile_context>
chip_gen: v7x
topology: tpu7x:2x2x1
jax: 0.10.0
libtpu: 0.0.40
codegen_flags: <defaults>
</compile_context>

<pallas_src>
import jax
import jax.numpy as jnp
from jax.experimental import pallas as pl
from jax.experimental.pallas import tpu as pltpu


def _linear_kernel(x_ref, w_ref, b_ref, o_ref):
    # x_ref: [TB, IN]  row-major batch tile, straight from HBM (no wrapper transpose)
    # w_ref: [IN, 1]   weight column, VMEM-resident across the whole grid
    # b_ref: [1, 1]    bias scalar in SMEM
    # o_ref: [1, TB]   lane-dense output row (unmasked vst)
    x_t = x_ref[...].T                       # (IN, TB): in-kernel XLU relayout,
                                             # hidden under the HBM DMA of the next tile
    w = w_ref[...]                           # (IN, 1) broadcasts across lanes
    b = b_ref[0, 0]
    # VPU multiply + cheap cross-sublane reduce over IN=10; MXU deliberately unused.
    y = jnp.sum(x_t * w, axis=0, keepdims=True) + b
    o_ref[...] = y.astype(o_ref.dtype)


def _round_up(v, m):
    return ((v + m - 1) // m) * m


def linear_forward(x, weight, bias, *, block_b=32768):
    """y = x @ weight.T + bias  (torch.nn.Linear(10, 1) forward).

    x:      [B, IN]   float32
    weight: [OUT, IN] float32 (PyTorch convention), OUT == 1
    bias:   [OUT]     float32
    returns [B, OUT]  float32
    """
    B, IN = x.shape
    OUT = weight.shape[0]
    assert OUT == 1 and weight.shape[1] == IN

    w_col = weight.T.astype(x.dtype)           # [IN, 1]  (free reshape: OUT == 1)
    b2d = bias.reshape(1, 1).astype(x.dtype)   # SMEM scalar

    # Batch tile: 128-aligned always (lane-dense output store, aligned DMA rows),
    # capped by block_b.  Ensure at least 2 grid steps when B > 128 so v7x's two
    # TensorCores both get work on the "parallel" batch axis.
    tb = min(block_b, _round_up(B, 128))
    if B > 128 and pl.cdiv(B, tb) < 2:
        tb = _round_up(pl.cdiv(B, 2), 128)
    grid_b = pl.cdiv(B, tb)

    # Advisory cost: what the call actually streams (x once, tiny w/b/out).
    cost = pl.CostEstimate(
        flops=2 * B * IN * OUT,
        transcendentals=0,
        bytes_accessed=4 * (B * IN + IN * OUT + OUT + B * OUT),
    )

    y_row = pl.pallas_call(
        _linear_kernel,
        out_shape=jax.ShapeDtypeStruct((OUT, B), x.dtype),
        grid=(grid_b,),
        in_specs=[
            pl.BlockSpec((tb, IN), lambda i: (i, 0)),            # x, row-major tiles
            pl.BlockSpec((IN, OUT), lambda i: (0, 0)),           # weight, VMEM-resident
            pl.BlockSpec(memory_space=pltpu.MemorySpace.SMEM),   # bias scalar in SMEM
        ],
        out_specs=pl.BlockSpec((OUT, tb), lambda i: (0, i)),     # lane-dense [1, tb]
        compiler_params=pltpu.CompilerParams(
            dimension_semantics=("parallel",),
            vmem_limit_bytes=48 * 1024 * 1024,
        ),
        cost_estimate=cost,
    )(x, w_col, b2d)

    # (1, B) -> (B, 1) is a contiguous reshape (bitcast), not a transpose.
    return y_row.reshape(B, OUT)


if __name__ == "__main__":
    key = jax.random.PRNGKey(0)
    kx, kw, kb, kx2 = jax.random.split(key, 4)

    B, IN, OUT = 8, 10, 1

    # PyTorch-style uniform(-1/sqrt(in), 1/sqrt(in)) init, seeded in-script.
    bound = 1.0 / (IN ** 0.5)
    weight = jax.random.uniform(kw, (OUT, IN), jnp.float32, -bound, bound)
    bias = jax.random.uniform(kb, (OUT,), jnp.float32, -bound, bound)

    # Small batch: single partial block, grid = 1.
    x = jax.random.normal(kx, (B, IN), jnp.float32)
    y = jax.block_until_ready(linear_forward(x, weight, bias))
    y_ref = x @ weight.T + bias
    assert y.shape == (B, OUT)
    assert jnp.allclose(y, y_ref, atol=1e-5, rtol=1e-5)

    # Larger batch: exercises the multi-tile path (grid >= 2, ragged last block).
    B2 = 200
    x2 = jax.random.normal(kx2, (B2, IN), jnp.float32)
    y2 = jax.block_until_ready(linear_forward(x2, weight, bias))
    y2_ref = x2 @ weight.T + bias
    assert y2.shape == (B2, OUT)
    assert jnp.allclose(y2, y2_ref, atol=1e-5, rtol=1e-5)

    print("KERNEL_OK")
</pallas_src>

<mosaic_0001>
module attributes {stable_mosaic.version = 11 : i64} {
  func.func @_linear_kernel(%arg0: i32, %arg1: memref<128x10xf32, #tpu.memory_space<vmem>>, %arg2: memref<10x1xf32, #tpu.memory_space<vmem>>, %arg3: memref<1x1xf32, #tpu.memory_space<smem>>, %arg4: memref<1x128xf32, #tpu.memory_space<vmem>>) attributes {dimension_semantics = [#tpu.dimension_semantics<parallel>], iteration_bounds = array<i64: 1>, scalar_prefetch = 0 : i64, scratch_operands = 0 : i64, tpu.core_type = #tpu.core_type<tc>, window_params = [{transform_indices = @transform_0, window_bounds = array<i64: 128, 10>}, {pipeline_mode = #tpu.pipeline_mode<synchronous>, transform_indices = @transform_1, window_bounds = array<i64: 10, 1>}, {transform_indices = @transform_2, window_bounds = array<i64: 1, 1>}, {transform_indices = @transform_3, window_bounds = array<i64: 1, 128>}]} {
    %c0 = arith.constant 0 : index
    %c0_0 = arith.constant 0 : index
    %0 = vector.load %arg1[%c0, %c0_0] : memref<128x10xf32, #tpu.memory_space<vmem>>, vector<128x10xf32>
    %1 = tpu.transpose %0, [1, 0] : vector<128x10xf32> -> vector<10x128xf32>
    %c0_1 = arith.constant 0 : index
    %c0_2 = arith.constant 0 : index
    %2 = vector.load %arg2[%c0_1, %c0_2] : memref<10x1xf32, #tpu.memory_space<vmem>>, vector<10x1xf32>
    %c0_3 = arith.constant 0 : index
    %c0_4 = arith.constant 0 : index
    %3 = memref.load %arg3[%c0_3, %c0_4] : memref<1x1xf32, #tpu.memory_space<smem>>
    %4 = vector.broadcast %2 : vector<10x1xf32> to vector<10x128xf32>
    %5 = arith.mulf %1, %4 : vector<10x128xf32>
    %cst = arith.constant dense<0.000000e+00> : vector<128xf32>
    %6 = vector.multi_reduction <add>, %5, %cst [0] : vector<10x128xf32> to vector<128xf32>
    %7 = vector.shape_cast %6 : vector<128xf32> to vector<1x128xf32>
    %8 = vector.broadcast %3 : f32 to vector<1x128xf32>
    %9 = arith.addf %7, %8 : vector<1x128xf32>
    %c0_5 = arith.constant 0 : index
    %c0_6 = arith.constant 0 : index
    %10 = vector.load %arg4[%c0_5, %c0_6] : memref<1x128xf32, #tpu.memory_space<vmem>>, vector<1x128xf32>
    tpu.vector_store %arg4[%c0_5, %c0_6], %9 {strides = array<i32>} : memref<1x128xf32, #tpu.memory_space<vmem>>, vector<1x128xf32>,
    return
  }
  func.func @transform_0(%arg0: i32) -> (i32, i32) {
    %c0_i32 = arith.constant 0 : i32
    %c0_i32_0 = arith.constant 0 : i32
    return %arg0, %c0_i32 : i32, i32
  }
  func.func @transform_1(%arg0: i32) -> (i32, i32) {
    %c0_i32 = arith.constant 0 : i32
    %c0_i32_0 = arith.constant 0 : i32
    %c0_i32_1 = arith.constant 0 : i32
    return %c0_i32, %c0_i32_0 : i32, i32
  }
  func.func @transform_2(%arg0: i32) -> (i32, i32) {
    %c0_i32 = arith.constant 0 : i32
    %c0_i32_0 = arith.constant 0 : i32
    %c0_i32_1 = arith.constant 0 : i32
    return %c0_i32, %c0_i32_0 : i32, i32
  }
  func.func @transform_3(%arg0: i32) -> (i32, i32) {
    %c0_i32 = arith.constant 0 : i32
    %c0_i32_0 = arith.constant 0 : i32
    return %c0_i32, %arg0 : i32, i32
  }
}

</mosaic_0001>

<bundles_post_ra>
// kernel: tpu_custom_call.1
= control target key start
LH: loop header
LB: loop body
LE: loop exit
PB: predicated region body
PF: predicated region fallthrough
CT: control target
= control target key end

     0   :  { %v132_v2 = vmov 0   ;;  %s223_s0 = inlined_call_operand.vmem [shape: f32[8,10], index: 0, kind: input, shape index: {}]   ;;  %s224_s1 = inlined_call_operand.vmem [shape: f32[10,1], index: 1, kind: input, shape index: {}]   ;;  %s225_s2 = inlined_call_operand.<no memory space> [shape: f32[1,1], index: 2, kind: input, shape index: {}]   ;;  %s226_s3 = inlined_call_operand.hbm [shape: f32[1,8], index: 3, kind: output, shape index: {}]  }
   0x1   :  { %v16_v0 = vld [vmem:[%s223_s0] sm:$0xff]  ;;  %v65_v1 = vld [vmem:[%s224_s1 + $0x8] sm:$0x3]  ;;  %107 = vset.pattern.permute.xlu0 %v132_v2  ;;  %v18_v5 = vld [vmem:[%s223_s0 + $0x10] sm:$0xff] }
   0x2   :  { %32 = vxpose.xlu1.b32.start [1/16] (narrow) %v16_v0, 16  ;;  %74 = vperm.xlu0 %107, %v65_v1   ;;  %v17_v3 = vld [vmem:[%s223_s0 + $0x8] sm:$0xff]  ;;  %v64_v4 = vld [vmem:[%s224_s1] sm:$0xff] }
   0x6   :  { %33 = vxpose.xlu1.b32.cont [2/16] (narrow) %v17_v3, 16  ;;  %69 = vperm.xlu0 %107, %v64_v4  }
   0x7   :  { %9 = vsyncpa [#allocation4], 0  ;;  %v19_v6 = vld [vmem:[%s223_s0 + $0x18] sm:$0xff]  ;;  %v20_v7 = vld [vmem:[%s223_s0 + $0x20] sm:$0xff]  ;;  %vm79_vm0 = vcmask 1041408   ;;  %v88_v32 = vstv %s225_s2 }
   0x8   :  { %v21_v8 = vld [vmem:[%s223_s0 + $0x28] sm:$0xff]  ;;  %v22_v9 = vld [vmem:[%s223_s0 + $0x30] sm:$0xff]  ;;  %v23_v10 = vld [vmem:[%s223_s0 + $0x38] sm:$0xff] }
   0x9   :  { %v24_v11 = vld [vmem:[%s223_s0 + $0x40] sm:$0xff]  ;;  %v25_v12 = vld [vmem:[%s223_s0 + $0x48] sm:$0xff]  ;;  %v26_v13 = vld [vmem:[%s223_s0 + $0x50] sm:$0xff] }
   0xa   :  { %34 = vxpose.xlu1.b32.cont [3/16] (narrow) %v18_v5, 16  ;;  %v27_v14 = vld [vmem:[%s223_s0 + $0x58] sm:$0xff]  ;;  %v28_v15 = vld [vmem:[%s223_s0 + $0x60] sm:$0xff]  ;;  %v29_v16 = vld [vmem:[%s223_s0 + $0x68] sm:$0xff] }
   0xb   :  { %v30_v17 = vld [vmem:[%s223_s0 + $0x70] sm:$0xff]  ;;  %v31_v18 = vld [vmem:[%s223_s0 + $0x78] sm:$0xff]  ;;  %s133_s0 = smov [#allocation3]  }
   0xc   :  { %s97_s22 = sshll.u32 %s133_s0, 4  ;;  %s98_s22 = int_to_ptr.vmem [resolvable:$true] %s97_s22 }
   0xd   :  { %s108_s23 = scalar_lea.vmem %s98_s22, 16  ;;  %s112_s24 = scalar_lea.vmem %s98_s22, 32 }
   0xe   :  { %35 = vxpose.xlu1.b32.cont [4/16] (narrow) %v19_v6, 16  ;;  %p109_p0 = scmp.ne.s32.totalorder %s98_s22, %s108_s23  ;;  %p113_p1 = scmp.lt.s32.totalorder %s98_s22, %s98_s22 }
   0xf   :  { %p114_p2 = scmp.lt.s32.totalorder %s112_s24, %s108_s23 }
  0x11   :  { %p115_p3 = por %p114_p2, %p113_p1 }
  0x12   :  { %36 = vxpose.xlu1.b32.cont [5/16] (narrow) %v20_v7, 16 }
  0x13   :  { %p116_p4 = pnand %p115_p3, %p109_p0 }
  0x16   :  { %37 = vxpose.xlu1.b32.cont [6/16] (narrow) %v21_v8, 16 }
  0x1a   :  { %38 = vxpose.xlu1.b32.cont [7/16] (narrow) %v22_v9, 16 }
  0x1e   :  { %39 = vxpose.xlu1.b32.cont [8/16] (narrow) %v23_v10, 16 }
  0x22   :  { %40 = vxpose.xlu1.b32.cont [9/16] (narrow) %v24_v11, 16 }
  0x26   :  { %41 = vxpose.xlu1.b32.cont [10/16] (narrow) %v25_v12, 16 }
  0x2a   :  { %42 = vxpose.xlu1.b32.cont [11/16] (narrow) %v26_v13, 16 }
  0x2e   :  { %43 = vxpose.xlu1.b32.cont [12/16] (narrow) %v27_v14, 16 }
  0x32   :  { %44 = vxpose.xlu1.b32.cont [13/16] (narrow) %v28_v15, 16 }
  0x36   :  { %45 = vxpose.xlu1.b32.cont [14/16] (narrow) %v29_v16, 16 }
  0x3a   :  { %46 = vxpose.xlu1.b32.cont [15/16] (narrow) %v30_v17, 16 }
  0x3e   :  { %47 = vxpose.xlu1.b32.end [16/16] (narrow) %v31_v18, 16 }
  0x81   :  { %v75_v19 = vpop.permute.xlu0 %74 }
  0x82   :  { %v48_v20 = vpop.trf.xlu1 }
  0x85   :  { %v70_v21 = vpop.permute.xlu0 %69 }
  0x86   :  { %v49_v22 = vpop.trf.xlu1  ;;  %v77_v23 = vmul.f32 %v70_v21, %v48_v20 }
  0x87   :  { %v78_v24 = vmul.f32 %v75_v19, %v49_v22 }
  0x89   :  { %v80_v25 = vsel %vm79_vm0, %v78_v24, 0.0 }
  0x8a   :  { %v81_v26 = vadd.f32 %v80_v25, %v77_v23 }
  0x8c   :  { %v82_v27 = vrot.slane %v81_v26, 4 }
  0x8e   :  { %v83_v28 = vadd.f32 %v82_v27, %v81_v26 }
  0x90   :  { %v84_v29 = vrot.slane %v83_v28, 2 }
  0x92   :  { %v85_v30 = vadd.f32 %v84_v29, %v83_v28 }
  0x94   :  { %v86_v31 = vrot.slane %v85_v30, 1 }
  0x96   :  { %v87_v33 = vadd.f32 %v86_v31, %v85_v30 }
  0x98   :  { %v89_v34 = vadd.f32 %v88_v32, %v87_v33 }
  0x9a   :  { %90 = vst [vmem:[#allocation3] sm:$0x1] %v89_v34 }
  0x9b   :  { %119 = shalt.err (!%p116_p4)
}
  0x9c   :  { %s120_s1 = scalar_lea.hbm %s226_s3, 16 }
  0x9d   :  { %p121_p5 = scmp.ne.s32.totalorder %s226_s3, %s120_s1  ;;  %p124_p6 = scmp.lt.u32.totalorder %s120_s1, %s226_s3 }
  0x9f   :  { %p126_p7 = pnand %p124_p6, %p121_p5 }
  0xa1   :  { %129 = shalt.err (!%p126_p7)
}
  0xa2   :  { %100 = dma.vmem_to_hbm [thread:$0]  %s98_s22, 16, %s226_s3, [#allocation4]  }
  0xa3   :  { %130 = dma.done.wait [#allocation4], 16  }
  0xa4   :  { %131 = vsyncadd [#allocation4], 4294967280 }
  0xa5   :  { %104 = vsyncpa [#allocation4], 1 }

</bundles_post_ra>
